<compile_context>
chip_gen: v6e
topology: v6e:2x2x1
jax: 0.10.0
libtpu: 0.0.40
codegen_flags: <defaults>
</compile_context>

<pallas_src>
import functools

import jax
import jax.numpy as jnp
from jax.experimental import pallas as pl
from jax.experimental.pallas import tpu as pltpu

LAMBD = 0.1  # F.softshrink(z, lambd=0.1) in the PyTorch module


def _softshrink(z, lambd):
    # z - clip(z, -lambd, lambd):  max + min + sub (3 VPU ops), no select masks.
    return z - jnp.clip(z, -lambd, lambd)


def lista_kernel(x_ref, w_ref, b_ref, theta_ref, psi_ref, alpha_ref, out_ref,
                 *, num_layers):
    # x_ref:     (1, C)      x_b repeated D times (lane-dense row), C = chunk*D
    # w_ref:     (D, 1)      W column (W has shape (D, 1))
    # b_ref:     (1, C)      bias tiled over the batch chunk
    # theta_ref: (L, D, D)   Theta (un-transposed)
    # psi_ref:   (L, D, D)   Psi   (un-transposed)
    # alpha_ref: (L, D, 1)   alpha columns
    # out_ref:   (D, C)      transposed state zT, zT[j, b*D+i] = z[b, i, j]
    x_row = x_ref[...]                                       # (1, C)

    # z0[b, i, j] = x_b * W[j, 0] + bias[i, 0]   ->   zT0 = W * x_row + bias_row
    z = w_ref[...].astype(jnp.float32) * x_row + b_ref[...]  # (D, C)

    for l in range(num_layers):                              # static, unrolled
        th = theta_ref[l]                                    # (D, D)
        z = jnp.dot(th, z.astype(th.dtype),
                    preferred_element_type=jnp.float32)      # Theta[l] @ zT
        z = z + alpha_ref[l] * x_row                         # (D,1)*(1,C) broadcast
        z = _softshrink(z, LAMBD)
        ps = psi_ref[l]                                      # (D, D)
        z = jnp.dot(ps, z.astype(ps.dtype),
                    preferred_element_type=jnp.float32)      # Psi[l] @ zT
        z = jnp.maximum(z, 0.0)

    out_ref[...] = z


def lista_forward(x, W, b, Theta, Psi, alpha, *, num_chunks=1,
                  weight_dtype=jnp.float32):
    """Pallas implementation of LISTA.forward.  x: (B, input_size=1).

    num_chunks:   grid extent over batch chunks (1 = single kernel step; use 2
                  on v7x with larger batches to feed both TensorCores).
    weight_dtype: dtype of the Theta/Psi MXU operands (jnp.bfloat16 on v6e/v7x
                  halves MXU passes; accumulation/elementwise stay f32).
    """
    B, input_size = x.shape
    assert input_size == 1, "reference forward only type-checks for input_size == 1"
    D = W.shape[0]
    L = Theta.shape[0]
    assert B % num_chunks == 0, "batch must divide evenly into chunks"
    C = (B // num_chunks) * D                       # lane width per grid step

    f32 = jnp.float32
    # Lane-dense x row: x_row[0, b*D + i] = x[b]
    x_row = jnp.repeat(x.reshape(B).astype(f32), D).reshape(1, B * D)
    # Bias tiled over the batch: b_row[0, b*D + i] = b[i, 0]
    b_row = jnp.tile(b.reshape(-1).astype(f32), (B,)).reshape(1, B * D)

    w_col = W.astype(f32)                           # (D, 1) - VPU use, keep f32
    alpha_f = alpha.astype(f32)                     # (L, D, 1) - VPU use, keep f32
    theta = Theta.astype(weight_dtype)              # (L, D, D) - MXU operand
    psi = Psi.astype(weight_dtype)                  # (L, D, D) - MXU operand

    out = pl.pallas_call(
        functools.partial(lista_kernel, num_layers=L),
        out_shape=jax.ShapeDtypeStruct((D, B * D), jnp.float32),
        grid_spec=pltpu.PrefetchScalarGridSpec(
            num_scalar_prefetch=0,
            grid=(num_chunks,),
            in_specs=[
                pl.BlockSpec((1, C), lambda c: (0, c)),        # x row chunk
                pl.BlockSpec((D, 1), lambda c: (0, 0)),        # W column
                pl.BlockSpec((1, C), lambda c: (0, c)),        # bias row chunk
                pl.BlockSpec((L, D, D), lambda c: (0, 0, 0)),  # Theta (resident)
                pl.BlockSpec((L, D, D), lambda c: (0, 0, 0)),  # Psi   (resident)
                pl.BlockSpec((L, D, 1), lambda c: (0, 0, 0)),  # alpha (resident)
            ],
            out_specs=pl.BlockSpec((D, C), lambda c: (0, c)),
        ),
        compiler_params=pltpu.CompilerParams(
            dimension_semantics=("parallel",)),
    )(x_row, w_col, b_row, theta, psi, alpha_f)

    # zT[j, b*D + i] = z[b, i, j]  =>  z.view(-1, dict_size) == zT.T
    return out.T


def lista_ref(x, W, b, Theta, Psi, alpha):
    """Pure-JAX reference mirroring the PyTorch forward exactly (f32)."""
    B = x.shape[0]
    D = W.shape[0]
    L = Theta.shape[0]
    hp = jax.lax.Precision.HIGHEST
    x3 = x.reshape(B, 1, 1)
    z = jnp.matmul(x3, W.T[None], precision=hp) + b          # (B, D, D)
    for l in range(L):
        z = (jnp.matmul(z, Theta[l].T, precision=hp)
             + jnp.matmul(x3, alpha[l].T[None], precision=hp))
        z = jnp.where(z > LAMBD, z - LAMBD,
                      jnp.where(z < -LAMBD, z + LAMBD, 0.0))
        z = jnp.matmul(z, Psi[l].T, precision=hp)
        z = jnp.maximum(z, 0.0)
    return z.reshape(B * D, D)


if __name__ == "__main__":
    B, input_size, dict_size, num_layers = 8, 1, 32, 4

    key = jax.random.PRNGKey(0)
    k = jax.random.split(key, 6)
    x = jax.random.normal(k[0], (B, input_size), jnp.float32)
    W = jax.random.normal(k[1], (dict_size, input_size), jnp.float32)
    b = jax.random.normal(k[2], (dict_size, 1), jnp.float32)
    Theta = jax.random.normal(k[3], (num_layers, dict_size, dict_size), jnp.float32)
    Psi = jax.random.normal(k[4], (num_layers, dict_size, dict_size), jnp.float32)
    alpha = jax.random.normal(k[5], (num_layers, dict_size, 1), jnp.float32)

    ref = lista_ref(x, W, b, Theta, Psi, alpha)

    # Default: single kernel step over the whole batch (lane width B*D = 256).
    out = jax.block_until_ready(lista_forward(x, W, b, Theta, Psi, alpha))
    assert out.shape == (B * dict_size, dict_size), out.shape
    rel_err = jnp.max(jnp.abs(out - ref) / (jnp.abs(ref) + 1.0))
    assert rel_err < 5e-2, f"mismatch vs reference (num_chunks=1): {rel_err}"

    # Chunked variant (2 x 128-lane steps) — the v7x two-TensorCore path.
    out2 = jax.block_until_ready(
        lista_forward(x, W, b, Theta, Psi, alpha, num_chunks=2))
    rel_err2 = jnp.max(jnp.abs(out2 - ref) / (jnp.abs(ref) + 1.0))
    assert rel_err2 < 5e-2, f"mismatch vs reference (num_chunks=2): {rel_err2}"

    print("KERNEL_OK")
</pallas_src>

<mosaic_0001>
module attributes {stable_mosaic.version = 11 : i64} {
  func.func @lista_kernel(%arg0: i32, %arg1: memref<1x256xf32, #tpu.memory_space<vmem>>, %arg2: memref<32x1xf32, #tpu.memory_space<vmem>>, %arg3: memref<1x256xf32, #tpu.memory_space<vmem>>, %arg4: memref<4x32x32xf32, #tpu.memory_space<vmem>>, %arg5: memref<4x32x32xf32, #tpu.memory_space<vmem>>, %arg6: memref<4x32x1xf32, #tpu.memory_space<vmem>>, %arg7: memref<32x256xf32, #tpu.memory_space<vmem>>) attributes {dimension_semantics = [#tpu.dimension_semantics<parallel>], iteration_bounds = array<i64: 1>, scalar_prefetch = 0 : i64, scratch_operands = 0 : i64, tpu.core_type = #tpu.core_type<tc>, window_params = [{transform_indices = @transform_0, window_bounds = array<i64: 1, 256>}, {pipeline_mode = #tpu.pipeline_mode<synchronous>, transform_indices = @transform_1, window_bounds = array<i64: 32, 1>}, {transform_indices = @transform_2, window_bounds = array<i64: 1, 256>}, {pipeline_mode = #tpu.pipeline_mode<synchronous>, transform_indices = @transform_3, window_bounds = array<i64: 4, 32, 32>}, {pipeline_mode = #tpu.pipeline_mode<synchronous>, transform_indices = @transform_4, window_bounds = array<i64: 4, 32, 32>}, {pipeline_mode = #tpu.pipeline_mode<synchronous>, transform_indices = @transform_5, window_bounds = array<i64: 4, 32, 1>}, {transform_indices = @transform_6, window_bounds = array<i64: 32, 256>}]} {
    %c0 = arith.constant 0 : index
    %c0_0 = arith.constant 0 : index
    %0 = vector.load %arg1[%c0, %c0_0] : memref<1x256xf32, #tpu.memory_space<vmem>>, vector<1x256xf32>
    %c0_1 = arith.constant 0 : index
    %c0_2 = arith.constant 0 : index
    %1 = vector.load %arg2[%c0_1, %c0_2] : memref<32x1xf32, #tpu.memory_space<vmem>>, vector<32x1xf32>
    %2 = vector.broadcast %1 : vector<32x1xf32> to vector<32x256xf32>
    %3 = vector.broadcast %0 : vector<1x256xf32> to vector<32x256xf32>
    %4 = arith.mulf %2, %3 : vector<32x256xf32>
    %c0_3 = arith.constant 0 : index
    %c0_4 = arith.constant 0 : index
    %5 = vector.load %arg3[%c0_3, %c0_4] : memref<1x256xf32, #tpu.memory_space<vmem>>, vector<1x256xf32>
    %6 = vector.broadcast %5 : vector<1x256xf32> to vector<32x256xf32>
    %7 = arith.addf %4, %6 : vector<32x256xf32>
    %c0_5 = arith.constant 0 : index
    %c0_6 = arith.constant 0 : index
    %c0_7 = arith.constant 0 : index
    %8 = vector.load %arg4[%c0_5, %c0_6, %c0_7] : memref<4x32x32xf32, #tpu.memory_space<vmem>>, vector<1x32x32xf32>
    %9 = vector.shape_cast %8 : vector<1x32x32xf32> to vector<32x32xf32>
    %cst = arith.constant dense<0.000000e+00> : vector<32x256xf32>
    %10 = tpu.matmul %9, %7, %cst {dimension_numbers = #tpu.dot_dimension_numbers<[1], [0], [0], [1], [0, 0, 1, 1], [], []>} : vector<32x32xf32>, vector<32x256xf32>, vector<32x256xf32> -> vector<32x256xf32>
    %c0_8 = arith.constant 0 : index
    %c0_9 = arith.constant 0 : index
    %c0_10 = arith.constant 0 : index
    %11 = vector.load %arg6[%c0_8, %c0_9, %c0_10] : memref<4x32x1xf32, #tpu.memory_space<vmem>>, vector<1x32x1xf32>
    %12 = vector.shape_cast %11 : vector<1x32x1xf32> to vector<32x1xf32>
    %13 = vector.broadcast %12 : vector<32x1xf32> to vector<32x256xf32>
    %14 = vector.broadcast %0 : vector<1x256xf32> to vector<32x256xf32>
    %15 = arith.mulf %13, %14 : vector<32x256xf32>
    %16 = arith.addf %10, %15 : vector<32x256xf32>
    %cst_11 = arith.constant -1.000000e-01 : f32
    %cst_12 = arith.constant 1.000000e-01 : f32
    %17 = vector.broadcast %cst_11 : f32 to vector<32x256xf32>
    %18 = arith.maximumf %17, %16 : vector<32x256xf32>
    %19 = vector.broadcast %cst_12 : f32 to vector<32x256xf32>
    %20 = arith.minimumf %19, %18 : vector<32x256xf32>
    %21 = arith.subf %16, %20 : vector<32x256xf32>
    %c0_13 = arith.constant 0 : index
    %c0_14 = arith.constant 0 : index
    %c0_15 = arith.constant 0 : index
    %22 = vector.load %arg5[%c0_13, %c0_14, %c0_15] : memref<4x32x32xf32, #tpu.memory_space<vmem>>, vector<1x32x32xf32>
    %23 = vector.shape_cast %22 : vector<1x32x32xf32> to vector<32x32xf32>
    %cst_16 = arith.constant dense<0.000000e+00> : vector<32x256xf32>
    %24 = tpu.matmul %23, %21, %cst_16 {dimension_numbers = #tpu.dot_dimension_numbers<[1], [0], [0], [1], [0, 0, 1, 1], [], []>} : vector<32x32xf32>, vector<32x256xf32>, vector<32x256xf32> -> vector<32x256xf32>
    %cst_17 = arith.constant 0.000000e+00 : f32
    %25 = vector.broadcast %cst_17 : f32 to vector<32x256xf32>
    %26 = arith.maximumf %24, %25 : vector<32x256xf32>
    %c1 = arith.constant 1 : index
    %c0_18 = arith.constant 0 : index
    %c0_19 = arith.constant 0 : index
    %27 = vector.load %arg4[%c1, %c0_18, %c0_19] : memref<4x32x32xf32, #tpu.memory_space<vmem>>, vector<1x32x32xf32>
    %28 = vector.shape_cast %27 : vector<1x32x32xf32> to vector<32x32xf32>
    %cst_20 = arith.constant dense<0.000000e+00> : vector<32x256xf32>
    %29 = tpu.matmul %28, %26, %cst_20 {dimension_numbers = #tpu.dot_dimension_numbers<[1], [0], [0], [1], [0, 0, 1, 1], [], []>} : vector<32x32xf32>, vector<32x256xf32>, vector<32x256xf32> -> vector<32x256xf32>
    %c1_21 = arith.constant 1 : index
    %c0_22 = arith.constant 0 : index
    %c0_23 = arith.constant 0 : index
    %30 = vector.load %arg6[%c1_21, %c0_22, %c0_23] : memref<4x32x1xf32, #tpu.memory_space<vmem>>, vector<1x32x1xf32>
    %31 = vector.shape_cast %30 : vector<1x32x1xf32> to vector<32x1xf32>
    %32 = vector.broadcast %31 : vector<32x1xf32> to vector<32x256xf32>
    %33 = vector.broadcast %0 : vector<1x256xf32> to vector<32x256xf32>
    %34 = arith.mulf %32, %33 : vector<32x256xf32>
    %35 = arith.addf %29, %34 : vector<32x256xf32>
    %cst_24 = arith.constant -1.000000e-01 : f32
    %cst_25 = arith.constant 1.000000e-01 : f32
    %36 = vector.broadcast %cst_24 : f32 to vector<32x256xf32>
    %37 = arith.maximumf %36, %35 : vector<32x256xf32>
    %38 = vector.broadcast %cst_25 : f32 to vector<32x256xf32>
    %39 = arith.minimumf %38, %37 : vector<32x256xf32>
    %40 = arith.subf %35, %39 : vector<32x256xf32>
    %c1_26 = arith.constant 1 : index
    %c0_27 = arith.constant 0 : index
    %c0_28 = arith.constant 0 : index
    %41 = vector.load %arg5[%c1_26, %c0_27, %c0_28] : memref<4x32x32xf32, #tpu.memory_space<vmem>>, vector<1x32x32xf32>
    %42 = vector.shape_cast %41 : vector<1x32x32xf32> to vector<32x32xf32>
    %cst_29 = arith.constant dense<0.000000e+00> : vector<32x256xf32>
    %43 = tpu.matmul %42, %40, %cst_29 {dimension_numbers = #tpu.dot_dimension_numbers<[1], [0], [0], [1], [0, 0, 1, 1], [], []>} : vector<32x32xf32>, vector<32x256xf32>, vector<32x256xf32> -> vector<32x256xf32>
    %cst_30 = arith.constant 0.000000e+00 : f32
    %44 = vector.broadcast %cst_30 : f32 to vector<32x256xf32>
    %45 = arith.maximumf %43, %44 : vector<32x256xf32>
    %c2 = arith.constant 2 : index
    %c0_31 = arith.constant 0 : index
    %c0_32 = arith.constant 0 : index
    %46 = vector.load %arg4[%c2, %c0_31, %c0_32] : memref<4x32x32xf32, #tpu.memory_space<vmem>>, vector<1x32x32xf32>
    %47 = vector.shape_cast %46 : vector<1x32x32xf32> to vector<32x32xf32>
    %cst_33 = arith.constant dense<0.000000e+00> : vector<32x256xf32>
    %48 = tpu.matmul %47, %45, %cst_33 {dimension_numbers = #tpu.dot_dimension_numbers<[1], [0], [0], [1], [0, 0, 1, 1], [], []>} : vector<32x32xf32>, vector<32x256xf32>, vector<32x256xf32> -> vector<32x256xf32>
    %c2_34 = arith.constant 2 : index
    %c0_35 = arith.constant 0 : index
    %c0_36 = arith.constant 0 : index
    %49 = vector.load %arg6[%c2_34, %c0_35, %c0_36] : memref<4x32x1xf32, #tpu.memory_space<vmem>>, vector<1x32x1xf32>
    %50 = vector.shape_cast %49 : vector<1x32x1xf32> to vector<32x1xf32>
    %51 = vector.broadcast %50 : vector<32x1xf32> to vector<32x256xf32>
    %52 = vector.broadcast %0 : vector<1x256xf32> to vector<32x256xf32>
    %53 = arith.mulf %51, %52 : vector<32x256xf32>
    %54 = arith.addf %48, %53 : vector<32x256xf32>
    %cst_37 = arith.constant -1.000000e-01 : f32
    %cst_38 = arith.constant 1.000000e-01 : f32
    %55 = vector.broadcast %cst_37 : f32 to vector<32x256xf32>
    %56 = arith.maximumf %55, %54 : vector<32x256xf32>
    %57 = vector.broadcast %cst_38 : f32 to vector<32x256xf32>
    %58 = arith.minimumf %57, %56 : vector<32x256xf32>
    %59 = arith.subf %54, %58 : vector<32x256xf32>
    %c2_39 = arith.constant 2 : index
    %c0_40 = arith.constant 0 : index
    %c0_41 = arith.constant 0 : index
    %60 = vector.load %arg5[%c2_39, %c0_40, %c0_41] : memref<4x32x32xf32, #tpu.memory_space<vmem>>, vector<1x32x32xf32>
    %61 = vector.shape_cast %60 : vector<1x32x32xf32> to vector<32x32xf32>
    %cst_42 = arith.constant dense<0.000000e+00> : vector<32x256xf32>
    %62 = tpu.matmul %61, %59, %cst_42 {dimension_numbers = #tpu.dot_dimension_numbers<[1], [0], [0], [1], [0, 0, 1, 1], [], []>} : vector<32x32xf32>, vector<32x256xf32>, vector<32x256xf32> -> vector<32x256xf32>
    %cst_43 = arith.constant 0.000000e+00 : f32
    %63 = vector.broadcast %cst_43 : f32 to vector<32x256xf32>
    %64 = arith.maximumf %62, %63 : vector<32x256xf32>
    %c3 = arith.constant 3 : index
    %c0_44 = arith.constant 0 : index
    %c0_45 = arith.constant 0 : index
    %65 = vector.load %arg4[%c3, %c0_44, %c0_45] : memref<4x32x32xf32, #tpu.memory_space<vmem>>, vector<1x32x32xf32>
    %66 = vector.shape_cast %65 : vector<1x32x32xf32> to vector<32x32xf32>
    %cst_46 = arith.constant dense<0.000000e+00> : vector<32x256xf32>
    %67 = tpu.matmul %66, %64, %cst_46 {dimension_numbers = #tpu.dot_dimension_numbers<[1], [0], [0], [1], [0, 0, 1, 1], [], []>} : vector<32x32xf32>, vector<32x256xf32>, vector<32x256xf32> -> vector<32x256xf32>
    %c3_47 = arith.constant 3 : index
    %c0_48 = arith.constant 0 : index
    %c0_49 = arith.constant 0 : index
    %68 = vector.load %arg6[%c3_47, %c0_48, %c0_49] : memref<4x32x1xf32, #tpu.memory_space<vmem>>, vector<1x32x1xf32>
    %69 = vector.shape_cast %68 : vector<1x32x1xf32> to vector<32x1xf32>
    %70 = vector.broadcast %69 : vector<32x1xf32> to vector<32x256xf32>
    %71 = vector.broadcast %0 : vector<1x256xf32> to vector<32x256xf32>
    %72 = arith.mulf %70, %71 : vector<32x256xf32>
    %73 = arith.addf %67, %72 : vector<32x256xf32>
    %cst_50 = arith.constant -1.000000e-01 : f32
    %cst_51 = arith.constant 1.000000e-01 : f32
    %74 = vector.broadcast %cst_50 : f32 to vector<32x256xf32>
    %75 = arith.maximumf %74, %73 : vector<32x256xf32>
    %76 = vector.broadcast %cst_51 : f32 to vector<32x256xf32>
    %77 = arith.minimumf %76, %75 : vector<32x256xf32>
    %78 = arith.subf %73, %77 : vector<32x256xf32>
    %c3_52 = arith.constant 3 : index
    %c0_53 = arith.constant 0 : index
    %c0_54 = arith.constant 0 : index
    %79 = vector.load %arg5[%c3_52, %c0_53, %c0_54] : memref<4x32x32xf32, #tpu.memory_space<vmem>>, vector<1x32x32xf32>
    %80 = vector.shape_cast %79 : vector<1x32x32xf32> to vector<32x32xf32>
    %cst_55 = arith.constant dense<0.000000e+00> : vector<32x256xf32>
    %81 = tpu.matmul %80, %78, %cst_55 {dimension_numbers = #tpu.dot_dimension_numbers<[1], [0], [0], [1], [0, 0, 1, 1], [], []>} : vector<32x32xf32>, vector<32x256xf32>, vector<32x256xf32> -> vector<32x256xf32>
    %cst_56 = arith.constant 0.000000e+00 : f32
    %82 = vector.broadcast %cst_56 : f32 to vector<32x256xf32>
    %83 = arith.maximumf %81, %82 : vector<32x256xf32>
    %c0_57 = arith.constant 0 : index
    %c0_58 = arith.constant 0 : index
    %84 = vector.load %arg7[%c0_57, %c0_58] : memref<32x256xf32, #tpu.memory_space<vmem>>, vector<32x256xf32>
    tpu.vector_store %arg7[%c0_57, %c0_58], %83 {strides = array<i32>} : memref<32x256xf32, #tpu.memory_space<vmem>>, vector<32x256xf32>,
    return
  }
  func.func @transform_0(%arg0: i32) -> (i32, i32) {
    %c0_i32 = arith.constant 0 : i32
    %c0_i32_0 = arith.constant 0 : i32
    return %c0_i32, %arg0 : i32, i32
  }
  func.func @transform_1(%arg0: i32) -> (i32, i32) {
    %c0_i32 = arith.constant 0 : i32
    %c0_i32_0 = arith.constant 0 : i32
    %c0_i32_1 = arith.constant 0 : i32
    return %c0_i32, %c0_i32_0 : i32, i32
  }
  func.func @transform_2(%arg0: i32) -> (i32, i32) {
    %c0_i32 = arith.constant 0 : i32
    %c0_i32_0 = arith.constant 0 : i32
    return %c0_i32, %arg0 : i32, i32
  }
  func.func @transform_3(%arg0: i32) -> (i32, i32, i32) {
    %c0_i32 = arith.constant 0 : i32
    %c0_i32_0 = arith.constant 0 : i32
    %c0_i32_1 = arith.constant 0 : i32
    %c0_i32_2 = arith.constant 0 : i32
    return %c0_i32, %c0_i32_0, %c0_i32_1 : i32, i32, i32
  }
  func.func @transform_4(%arg0: i32) -> (i32, i32, i32) {
    %c0_i32 = arith.constant 0 : i32
    %c0_i32_0 = arith.constant 0 : i32
    %c0_i32_1 = arith.constant 0 : i32
    %c0_i32_2 = arith.constant 0 : i32
    return %c0_i32, %c0_i32_0, %c0_i32_1 : i32, i32, i32
  }
  func.func @transform_5(%arg0: i32) -> (i32, i32, i32) {
    %c0_i32 = arith.constant 0 : i32
    %c0_i32_0 = arith.constant 0 : i32
    %c0_i32_1 = arith.constant 0 : i32
    %c0_i32_2 = arith.constant 0 : i32
    return %c0_i32, %c0_i32_0, %c0_i32_1 : i32, i32, i32
  }
  func.func @transform_6(%arg0: i32) -> (i32, i32) {
    %c0_i32 = arith.constant 0 : i32
    %c0_i32_0 = arith.constant 0 : i32
    return %c0_i32, %arg0 : i32, i32
  }
}

</mosaic_0001>

<bundles_post_ra>
// kernel: tpu_custom_call.1
= control target key start
LH: loop header
LB: loop body
LE: loop exit
PB: predicated region body
PF: predicated region fallthrough
CT: control target
= control target key end

     0   :  { %11 = vsyncpa [#allocation3], 0  ;;  %s1646_s0 = inlined_call_operand.vmem [shape: f32[1,256], index: 0, kind: input, shape index: {}]   ;;  %s1647_s1 = inlined_call_operand.vmem [shape: f32[32,1], index: 1, kind: input, shape index: {}]   ;;  %s1648_s2 = inlined_call_operand.vmem [shape: f32[1,256], index: 2, kind: input, shape index: {}]   ;;  %s1649_s3 = inlined_call_operand.vmem [shape: f32[4,32,32], index: 3, kind: input, shape index: {}]   ;;  %s1650_s4 = inlined_call_operand.hbm [shape: f32[4,32,32], index: 4, kind: input, shape index: {}]   ;;  %s1651_s5 = inlined_call_operand.vmem [shape: f32[4,32,1], index: 5, kind: input, shape index: {}]   ;;  %s1652_s6 = inlined_call_operand.hbm [shape: f32[32,256], index: 6, kind: output, shape index: {}]  }
   0x1   :  { %12 = vsyncpa [#allocation4], 0  ;;  %s1375_s21 = smov [#allocation2]  }
   0x2   :  { %s26_s22 = sshll.u32 %s1375_s21, 4  ;;  %s27_s22 = int_to_ptr.vmem [resolvable:$true] %s26_s22 }
   0x3   :  { %s1339_s23 = scalar_lea.vmem %s27_s22, 2048  ;;  %p1344_p1 = scmp.lt.s32.totalorder %s27_s22, %s27_s22 }
   0x4   :  { %p1340_p0 = scmp.ne.s32.totalorder %s27_s22, %s1339_s23  ;;  %p1345_p2 = scmp.lt.s32.totalorder %s1339_s23, %s1339_s23 }
   0x6   :  { %p1346_p3 = por %p1345_p2, %p1344_p1 }
   0x8   :  { %p1347_p4 = pnand %p1346_p3, %p1340_p0 }
   0xa   :  { %1350 = shalt.err (!%p1347_p4)
}
   0xb   :  { %s1376_s24 = smov 128   ;;  %s1377_s25 = smov 8  }
   0xc   :  { %32 = dma.hbm_to_vmem [thread:$0]  %s1650_s4, 2048, %s27_s22, [#allocation3], %s1376_s24, %s1376_s24, %s1377_s25  }
   0xd   :  { %1371 = dma.done.wait [#allocation3], 2048  }
   0xe   :  { %1372 = vsyncadd [#allocation3], 4294965248  ;;  %v1378_v0 = vmov 0   ;;  %v42_v1 = vld [vmem:[%s1647_s1 + $0x18] sm:$0xff]  ;;  %v40_v2 = vld [vmem:[%s1647_s1 + $0x8] sm:$0xff]  ;;  %v1379_v9 = vmov 0.0   ;;  %v64_v22 = vlaneseq }
   0xf   :  { %1330 = vset.pattern.permute.xlu1 %v1378_v0  ;;  %1329 = vset.pattern.permute.xlu0 %v1378_v0  ;;  %v41_v3 = vld [vmem:[%s1647_s1 + $0x10] sm:$0xff]  ;;  %v39_v4 = vld [vmem:[%s1647_s1] sm:$0xff]  ;;  %v109_v5 = vld [vmem:[%s1651_s5 + $0x18] sm:$0xff]  ;;  %vm138_vm0 = vcmask 261120  }
  0x10   :  { %60 = vperm.xlu0 %1329, %v42_v1   ;;  %50 = vperm.xlu1 %1330, %v40_v2   ;;  %v108_v6 = vld [vmem:[%s1651_s5 + $0x10] sm:$0xff]  ;;  %v107_v7 = vld [vmem:[%s1651_s5 + $0x8] sm:$0xff]  ;;  %v106_v8 = vld [vmem:[%s1651_s5] sm:$0xff]  ;;  %v65_v23 = vshrl.u32 %v64_v22, 7 }
  0x11   :  { %215 = vmatprep.mubr.f32.mxu0 %v1379_v9  ;;  %344 = vmatprep.mubr.f32.mxu1 %v1379_v9  ;;  %v1256_v10 = vld [vmem:[%s1651_s5 + $0x38] sm:$0xff]  ;;  %v1255_v11 = vld [vmem:[%s1651_s5 + $0x30] sm:$0xff]  ;;  %v1254_v12 = vld [vmem:[%s1651_s5 + $0x28] sm:$0xff] }
  0x12   :  { %v1253_v13 = vld [vmem:[%s1651_s5 + $0x20] sm:$0xff]  ;;  %v1280_v14 = vld [vmem:[%s1651_s5 + $0x58] sm:$0xff]  ;;  %v1279_v15 = vld [vmem:[%s1651_s5 + $0x50] sm:$0xff]  ;;  %v66_v24 = vsub.s32 0, %v65_v23  ;;  %v70_v25 = vsub.s32 1, %v65_v23 }
  0x13   :  { %v1278_v16 = vld [vmem:[%s1651_s5 + $0x48] sm:$0xff]  ;;  %v1277_v17 = vld [vmem:[%s1651_s5 + $0x40] sm:$0xff]  ;;  %v1304_v18 = vld [vmem:[%s1651_s5 + $0x78] sm:$0xff] }
  0x14   :  { %55 = vperm.xlu0 %1329, %v41_v3   ;;  %45 = vperm.xlu1 %1330, %v39_v4   ;;  %v1303_v19 = vld [vmem:[%s1651_s5 + $0x70] sm:$0xff]  ;;  %v1302_v20 = vld [vmem:[%s1651_s5 + $0x68] sm:$0xff]  ;;  %v1301_v21 = vld [vmem:[%s1651_s5 + $0x60] sm:$0xff] }
  0x15   :  { %v38_v26 = vld [vmem:[%s1646_s0] sm:$0x3]  ;;  %v103_v53 = vld [vmem:[%s1649_s3 + $0x8] sm:$0xff]  ;;  %v104_v54 = vld [vmem:[%s1649_s3 + $0x10] sm:$0xff] }
  0x16   :  { %v82_v27 = vld [vmem:[%s1648_s2] sm:$0x3]  ;;  %v1489_v28 = vrot.slane %v38_v26, %v66_v24  ;;  %v1491_v29 = vrot.slane %v38_v26, %v70_v25  ;;  %v105_v55 = vld [vmem:[%s1649_s3 + $0x18] sm:$0xff] }
  0x17   :  { %v87_v30 = vrot.slane %v82_v27, %v66_v24  ;;  %v91_v31 = vrot.slane %v82_v27, %v70_v25  ;;  %v102_v52 = vld [vmem:[%s1649_s3] sm:$0xff] }
  0x18   :  { %127 = vperm.xlu0 %1329, %v109_v5   ;;  %122 = vperm.xlu1 %1330, %v108_v6  }
  0x1c   :  { %117 = vperm.xlu0 %1329, %v107_v7   ;;  %112 = vperm.xlu1 %1330, %v106_v8  }
  0x20   :  { %404 = vperm.xlu0 %1329, %v1256_v10   ;;  %399 = vperm.xlu1 %1330, %v1255_v11  }
  0x24   :  { %394 = vperm.xlu0 %1329, %v1254_v12   ;;  %389 = vperm.xlu1 %1330, %v1253_v13  }
  0x28   :  { %681 = vperm.xlu0 %1329, %v1280_v14   ;;  %676 = vperm.xlu1 %1330, %v1279_v15  }
  0x2c   :  { %671 = vperm.xlu0 %1329, %v1278_v16   ;;  %666 = vperm.xlu1 %1330, %v1277_v17  }
  0x30   :  { %958 = vperm.xlu0 %1329, %v1304_v18   ;;  %953 = vperm.xlu1 %1330, %v1303_v19  }
  0x34   :  { %948 = vperm.xlu0 %1329, %v1302_v20   ;;  %943 = vperm.xlu1 %1330, %v1301_v21  }
  0x8b   :  { %v61_v32 = vpop.permute.xlu0 %60  ;;  %v51_v33 = vpop.permute.xlu1 %50 }
  0x8c   :  { %v80_v34 = vmul.f32 %v1489_v28, %v61_v32  ;;  %v81_v35 = vmul.f32 %v1491_v29, %v61_v32  ;;  %v77_v40 = vmul.f32 %v1491_v29, %v51_v33  ;;  %v76_v43 = vmul.f32 %v1489_v28, %v51_v33 }
  0x8e   :  { %v101_v36 = vadd.f32 %v91_v31, %v81_v35  ;;  %v100_v37 = vadd.f32 %v87_v30, %v80_v34  ;;  %v97_v48 = vadd.f32 %v91_v31, %v77_v40  ;;  %v96_v49 = vadd.f32 %v87_v30, %v76_v43  ;;  %v265_v40 = vld [vmem:[#allocation2 + $0x8] sm:$0xff] }
  0x8f   :  { %v56_v38 = vpop.permute.xlu0 %55  ;;  %v46_v39 = vpop.permute.xlu1 %45 }
  0x90   :  { %v78_v41 = vmul.f32 %v1489_v28, %v56_v38  ;;  %v79_v42 = vmul.f32 %v1491_v29, %v56_v38  ;;  %175 = vmatprep.subr.mxu0 %v101_v36  ;;  %v75_v46 = vmul.f32 %v1491_v29, %v46_v39  ;;  %v74_v47 = vmul.f32 %v1489_v28, %v46_v39  ;;  %v264_v39 = vld [vmem:[#allocation2] sm:$0xff] }
  0x91   :  { %176 = vmatpush1.msra.mxu0 %v100_v37 }
  0x92   :  { %v98_v44 = vadd.f32 %v87_v30, %v78_v41  ;;  %v99_v45 = vadd.f32 %v91_v31, %v79_v42  ;;  %v95_v50 = vadd.f32 %v91_v31, %v75_v46  ;;  %v94_v51 = vadd.f32 %v87_v30, %v74_v47  ;;  %v266_v41 = vld [vmem:[#allocation2 + $0x10] sm:$0xff]  ;;  %v267_v42 = vld [vmem:[#allocation2 + $0x18] sm:$0xff] }
  0x93   :  { %v128_v58 = vpop.permute.xlu0 %127  ;;  %v123_v60 = vpop.permute.xlu1 %122 }
  0x94   :  { %177 = vmatprep.subr.mxu0 %v99_v45  ;;  %v136_v1 = vmul.f32 %v128_v58, %v1489_v28  ;;  %v135_v2 = vmul.f32 %v123_v60, %v1491_v29  ;;  %v134_v3 = vmul.f32 %v123_v60, %v1489_v28  ;;  %v137_v6 = vmul.f32 %v128_v58, %v1491_v29  ;;  %v1250_v60 = vld [vmem:[%s1649_s3 + $0x28] sm:$0xff] }
  0x95   :  { %178 = vmatpush1.msra.mxu0 %v98_v44 }
  0x96   :  { %179 = vmatprep.subr.mxu0 %v97_v48 }
  0x97   :  { %180 = vmatpush1.msra.mxu0 %v96_v49  ;;  %v118_v63 = vpop.permute.xlu0 %117  ;;  %v113_v4 = vpop.permute.xlu1 %112 }
  0x98   :  { %181 = vmatprep.subr.mxu0 %v95_v50  ;;  %v133_v7 = vmul.f32 %v118_v63, %v1491_v29  ;;  %v132_v11 = vmul.f32 %v118_v63, %v1489_v28  ;;  %v131_v14 = vmul.f32 %v113_v4, %v1491_v29  ;;  %v130_v17 = vmul.f32 %v113_v4, %v1489_v28 }
  0x99   :  { %182 = vmatpush1.msra.mxu0 %v94_v51 }
  0x9a   :  { %1233 = vmatmul.mubr.msk.f32.vlgmr.msra.gmra.mxu0 %vm138_vm0, %v102_v52 }
  0x9b   :  { %221 = vmatprep.mubr.f32.mxu0 %v1379_v9 }
  0x9e   :  { %1234 = vmatmul.mubr.msk.f32.gmra.mxu0 %vm138_vm0, %v103_v53 }
  0x9f   :  { %227 = vmatprep.mubr.f32.mxu0 %v1379_v9 }
  0xa2   :  { %1235 = vmatmul.mubr.msk.f32.gmra.mxu0 %vm138_vm0, %v104_v54 }
  0xa3   :  { %233 = vmatprep.mubr.f32.mxu0 %v1379_v9 }
  0xa6   :  { %1236 = vmatmul.mubr.msk.f32.gmra.mxu0 %vm138_vm0, %v105_v55 }
  0xa7   :  { %491 = vmatprep.mubr.f32.mxu0 %v1379_v9 }
 0x15a   :  { %v217_v56 = vpop.f32.mrf.mxu0 }
 0x15b   :  { %v218_v23 = vadd.f32 %v217_v56, %v130_v17 }
 0x15c   :  { %v219_v57 = vpop.f32.mrf.mxu0 }
 0x15d   :  { %v220_v20 = vadd.f32 %v219_v57, %v131_v14  ;;  %v1237_v33 = vclamps-f32 %v218_v23, 0.1 }
 0x15e   :  { %v223_v59 = vpop.f32.mrf.mxu0 }
 0x15f   :  { %v224_v18 = vadd.f32 %v223_v59, %v132_v11  ;;  %v1238_v31 = vclamps-f32 %v220_v20, 0.1  ;;  %v256_v38 = vsub.f32 %v218_v23, %v1237_v33  ;;  %v1249_v59 = vld [vmem:[%s1649_s3 + $0x20] sm:$0xff] }
 0x160   :  { %v225_v61 = vpop.f32.mrf.mxu0 }
 0x161   :  { %v226_v15 = vadd.f32 %v225_v61, %v133_v7  ;;  %v1239_v27 = vclamps-f32 %v224_v18, 0.1  ;;  %v257_v37 = vsub.f32 %v220_v20, %v1238_v31  ;;  %v1251_v61 = vld [vmem:[%s1649_s3 + $0x30] sm:$0xff] }
 0x162   :  { %v229_v62 = vpop.f32.mrf.mxu0 }
 0x163   :  { %v230_v12 = vadd.f32 %v229_v62, %v134_v3  ;;  %v1240_v25 = vclamps-f32 %v226_v15, 0.1  ;;  %v258_v36 = vsub.f32 %v224_v18, %v1239_v27  ;;  %v1252_v62 = vld [vmem:[%s1649_s3 + $0x38] sm:$0xff]  ;;  %v400_v3 = vpop.permute.xlu1 %399 }
 0x164   :  { %v231_v0 = vpop.f32.mrf.mxu0  ;;  %v411_v11 = vmul.f32 %v400_v3, %v1489_v28 }
 0x165   :  { %v232_v8 = vadd.f32 %v231_v0, %v135_v2  ;;  %v1241_v24 = vclamps-f32 %v230_v12, 0.1  ;;  %v259_v35 = vsub.f32 %v226_v15, %v1240_v25 }
 0x166   :  { %v235_v5 = vpop.f32.mrf.mxu0 }
 0x167   :  { %v236_v10 = vadd.f32 %v235_v5, %v136_v1  ;;  %v1242_v21 = vclamps-f32 %v232_v8, 0.1  ;;  %v260_v34 = vsub.f32 %v230_v12, %v1241_v24  ;;  %v405_v1 = vpop.permute.xlu0 %404  ;;  %v390_v12 = vpop.permute.xlu1 %389 }
 0x168   :  { %v237_v13 = vpop.f32.mrf.mxu0  ;;  %v414_v14 = vmul.f32 %v405_v1, %v1491_v29  ;;  %v407_v24 = vmul.f32 %v390_v12, %v1489_v28 }
 0x169   :  { %v238_v16 = vadd.f32 %v237_v13, %v137_v6  ;;  %v1243_v19 = vclamps-f32 %v236_v10, 0.1  ;;  %v261_v32 = vsub.f32 %v232_v8, %v1242_v21  ;;  %v413_v8 = vmul.f32 %v405_v1, %v1489_v28 }
 0x16a   :  { %v408_v21 = vmul.f32 %v390_v12, %v1491_v29 }
 0x16b   :  { %v1244_v22 = vclamps-f32 %v238_v16, 0.1  ;;  %v262_v30 = vsub.f32 %v236_v10, %v1243_v19  ;;  %v395_v6 = vpop.permute.xlu0 %394  ;;  %v412_v10 = vmul.f32 %v400_v3, %v1491_v29  ;;  %v1274_v3 = vld [vmem:[%s1649_s3 + $0x48] sm:$0xff] }
 0x16c   :  { %v410_v15 = vmul.f32 %v395_v6, %v1491_v29  ;;  %v409_v18 = vmul.f32 %v395_v6, %v1489_v28 }
 0x16d   :  { %v263_v26 = vsub.f32 %v238_v16, %v1244_v22 }
 0x16f   :  { %304 = vmatprep.subr.mxu1 %v263_v26 }
 0x170   :  { %305 = vmatpush1.msra.mxu1 %v262_v30 }
 0x171   :  { %306 = vmatprep.subr.mxu1 %v261_v32 }
 0x172   :  { %307 = vmatpush1.msra.mxu1 %v260_v34 }
 0x173   :  { %308 = vmatprep.subr.mxu1 %v259_v35 }
 0x174   :  { %309 = vmatpush1.msra.mxu1 %v258_v36 }
 0x175   :  { %310 = vmatprep.subr.mxu1 %v257_v37 }
 0x176   :  { %311 = vmatpush1.msra.mxu1 %v256_v38 }
 0x177   :  { %1245 = vmatmul.mubr.msk.f32.vlgmr.msra.gmra.mxu1 %vm138_vm0, %v264_v39 }
 0x178   :  { %350 = vmatprep.mubr.f32.mxu1 %v1379_v9 }
 0x17b   :  { %1246 = vmatmul.mubr.msk.f32.gmra.mxu1 %vm138_vm0, %v265_v40 }
 0x17c   :  { %356 = vmatprep.mubr.f32.mxu1 %v1379_v9 }
 0x17f   :  { %1247 = vmatmul.mubr.msk.f32.gmra.mxu1 %vm138_vm0, %v266_v41 }
 0x180   :  { %362 = vmatprep.mubr.f32.mxu1 %v1379_v9 }
 0x183   :  { %1248 = vmatmul.mubr.msk.f32.gmra.mxu1 %vm138_vm0, %v267_v42 }
 0x184   :  { %621 = vmatprep.mubr.f32.mxu1 %v1379_v9 }
 0x237   :  { %v346_v43 = vpop.f32.mrf.mxu1 }
 0x238   :  { %v369_v58 = vmax.f32 %v346_v43, 0.0 }
 0x239   :  { %v348_v44 = vpop.f32.mrf.mxu1 }
 0x23a   :  { %v370_v57 = vmax.f32 %v348_v44, 0.0 }
 0x23b   :  { %v352_v45 = vpop.f32.mrf.mxu1 }
 0x23c   :  { %v371_v56 = vmax.f32 %v352_v45, 0.0 }
 0x23d   :  { %v354_v46 = vpop.f32.mrf.mxu1 }
 0x23e   :  { %v372_v55 = vmax.f32 %v354_v46, 0.0  ;;  %v541_v46 = vld [vmem:[#allocation2 + $0x20] sm:$0xff] }
 0x23f   :  { %v358_v47 = vpop.f32.mrf.mxu1 }
 0x240   :  { %v373_v54 = vmax.f32 %v358_v47, 0.0  ;;  %v542_v47 = vld [vmem:[#allocation2 + $0x28] sm:$0xff] }
 0x241   :  { %v360_v48 = vpop.f32.mrf.mxu1 }
 0x242   :  { %v374_v53 = vmax.f32 %v360_v48, 0.0  ;;  %v543_v48 = vld [vmem:[#allocation2 + $0x30] sm:$0xff] }
 0x243   :  { %v364_v49 = vpop.f32.mrf.mxu1 }
 0x244   :  { %v375_v52 = vmax.f32 %v364_v49, 0.0  ;;  %v544_v49 = vld [vmem:[#allocation2 + $0x38] sm:$0xff] }
 0x245   :  { %v366_v50 = vpop.f32.mrf.mxu1 }
 0x246   :  { %v376_v51 = vmax.f32 %v366_v50, 0.0 }
 0x248   :  { %451 = vmatprep.subr.mxu0 %v376_v51 }
 0x249   :  { %452 = vmatpush1.msra.mxu0 %v375_v52 }
 0x24a   :  { %453 = vmatprep.subr.mxu0 %v374_v53 }
 0x24b   :  { %454 = vmatpush1.msra.mxu0 %v373_v54 }
 0x24c   :  { %455 = vmatprep.subr.mxu0 %v372_v55 }
 0x24d   :  { %456 = vmatpush1.msra.mxu0 %v371_v56 }
 0x24e   :  { %457 = vmatprep.subr.mxu0 %v370_v57 }
 0x24f   :  { %458 = vmatpush1.msra.mxu0 %v369_v58 }
 0x250   :  { %1257 = vmatmul.mubr.msk.f32.vlgmr.msra.gmra.mxu0 %vm138_vm0, %v1249_v59 }
 0x251   :  { %497 = vmatprep.mubr.f32.mxu0 %v1379_v9 }
 0x254   :  { %1258 = vmatmul.mubr.msk.f32.gmra.mxu0 %vm138_vm0, %v1250_v60 }
 0x255   :  { %503 = vmatprep.mubr.f32.mxu0 %v1379_v9 }
 0x258   :  { %1259 = vmatmul.mubr.msk.f32.gmra.mxu0 %vm138_vm0, %v1251_v61 }
 0x259   :  { %509 = vmatprep.mubr.f32.mxu0 %v1379_v9 }
 0x25c   :  { %1260 = vmatmul.mubr.msk.f32.gmra.mxu0 %vm138_vm0, %v1252_v62 }
 0x25d   :  { %768 = vmatprep.mubr.f32.mxu0 %v1379_v9 }
 0x310   :  { %v493_v63 = vpop.f32.mrf.mxu0 }
 0x311   :  { %v494_v32 = vadd.f32 %v493_v63, %v407_v24 }
 0x312   :  { %v495_v0 = vpop.f32.mrf.mxu0 }
 0x313   :  { %v496_v27 = vadd.f32 %v495_v0, %v408_v21  ;;  %v1261_v40 = vclamps-f32 %v494_v32, 0.1 }
 0x314   :  { %v499_v2 = vpop.f32.mrf.mxu0 }
 0x315   :  { %v500_v25 = vadd.f32 %v499_v2, %v409_v18  ;;  %v1262_v38 = vclamps-f32 %v496_v27, 0.1  ;;  %v532_v45 = vsub.f32 %v494_v32, %v1261_v40  ;;  %v1273_v2 = vld [vmem:[%s1649_s3 + $0x40] sm:$0xff] }
 0x316   :  { %v501_v4 = vpop.f32.mrf.mxu0 }
 0x317   :  { %v502_v22 = vadd.f32 %v501_v4, %v410_v15  ;;  %v1263_v36 = vclamps-f32 %v500_v25, 0.1  ;;  %v533_v44 = vsub.f32 %v496_v27, %v1262_v38  ;;  %v1275_v4 = vld [vmem:[%s1649_s3 + $0x50] sm:$0xff] }
 0x318   :  { %v505_v5 = vpop.f32.mrf.mxu0 }
 0x319   :  { %v506_v19 = vadd.f32 %v505_v5, %v411_v11  ;;  %v1264_v34 = vclamps-f32 %v502_v22, 0.1  ;;  %v534_v43 = vsub.f32 %v500_v25, %v1263_v36  ;;  %v1276_v5 = vld [vmem:[%s1649_s3 + $0x58] sm:$0xff]  ;;  %v677_v11 = vpop.permute.xlu1 %676 }
 0x31a   :  { %v507_v7 = vpop.f32.mrf.mxu0  ;;  %v688_v18 = vmul.f32 %v677_v11, %v1489_v28 }
 0x31b   :  { %v508_v16 = vadd.f32 %v507_v7, %v412_v10  ;;  %v1265_v33 = vclamps-f32 %v506_v19, 0.1  ;;  %v535_v42 = vsub.f32 %v502_v22, %v1264_v34 }
 0x31c   :  { %v511_v13 = vpop.f32.mrf.mxu0 }
 0x31d   :  { %v512_v17 = vadd.f32 %v511_v13, %v413_v8  ;;  %v1266_v30 = vclamps-f32 %v508_v16, 0.1  ;;  %v536_v41 = vsub.f32 %v506_v19, %v1265_v33  ;;  %v682_v8 = vpop.permute.xlu0 %681  ;;  %v667_v19 = vpop.permute.xlu1 %666 }
 0x31e   :  { %v513_v20 = vpop.f32.mrf.mxu0  ;;  %v691_v21 = vmul.f32 %v682_v8, %v1491_v29  ;;  %v684_v33 = vmul.f32 %v667_v19, %v1489_v28 }
 0x31f   :  { %v514_v23 = vadd.f32 %v513_v20, %v414_v14  ;;  %v1267_v26 = vclamps-f32 %v512_v17, 0.1  ;;  %v537_v39 = vsub.f32 %v508_v16, %v1266_v30  ;;  %v690_v16 = vmul.f32 %v682_v8, %v1489_v28 }
 0x320   :  { %v685_v30 = vmul.f32 %v667_v19, %v1491_v29 }
 0x321   :  { %v1268_v31 = vclamps-f32 %v514_v23, 0.1  ;;  %v538_v37 = vsub.f32 %v512_v17, %v1267_v26  ;;  %v672_v14 = vpop.permute.xlu0 %671  ;;  %v689_v17 = vmul.f32 %v677_v11, %v1491_v29  ;;  %v1298_v11 = vld [vmem:[%s1649_s3 + $0x68] sm:$0xff] }
 0x322   :  { %v687_v22 = vmul.f32 %v672_v14, %v1491_v29  ;;  %v686_v25 = vmul.f32 %v672_v14, %v1489_v28 }
 0x323   :  { %v539_v35 = vsub.f32 %v514_v23, %v1268_v31 }
 0x325   :  { %581 = vmatprep.subr.mxu1 %v539_v35 }
 0x326   :  { %582 = vmatpush1.msra.mxu1 %v538_v37 }
 0x327   :  { %583 = vmatprep.subr.mxu1 %v537_v39 }
 0x328   :  { %584 = vmatpush1.msra.mxu1 %v536_v41 }
 0x329   :  { %585 = vmatprep.subr.mxu1 %v535_v42 }
 0x32a   :  { %586 = vmatpush1.msra.mxu1 %v534_v43 }
 0x32b   :  { %587 = vmatprep.subr.mxu1 %v533_v44 }
 0x32c   :  { %588 = vmatpush1.msra.mxu1 %v532_v45 }
 0x32d   :  { %1269 = vmatmul.mubr.msk.f32.vlgmr.msra.gmra.mxu1 %vm138_vm0, %v541_v46 }
 0x32e   :  { %627 = vmatprep.mubr.f32.mxu1 %v1379_v9 }
 0x331   :  { %1270 = vmatmul.mubr.msk.f32.gmra.mxu1 %vm138_vm0, %v542_v47 }
 0x332   :  { %633 = vmatprep.mubr.f32.mxu1 %v1379_v9 }
 0x335   :  { %1271 = vmatmul.mubr.msk.f32.gmra.mxu1 %vm138_vm0, %v543_v48 }
 0x336   :  { %639 = vmatprep.mubr.f32.mxu1 %v1379_v9 }
 0x339   :  { %1272 = vmatmul.mubr.msk.f32.gmra.mxu1 %vm138_vm0, %v544_v49 }
 0x33a   :  { %898 = vmatprep.mubr.f32.mxu1 %v1379_v9 }
 0x3ed   :  { %v623_v50 = vpop.f32.mrf.mxu1 }
 0x3ee   :  { %v646_v1 = vmax.f32 %v623_v50, 0.0 }
 0x3ef   :  { %v625_v51 = vpop.f32.mrf.mxu1 }
 0x3f0   :  { %v647_v0 = vmax.f32 %v625_v51, 0.0 }
 0x3f1   :  { %v629_v52 = vpop.f32.mrf.mxu1 }
 0x3f2   :  { %v648_v63 = vmax.f32 %v629_v52, 0.0 }
 0x3f3   :  { %v631_v53 = vpop.f32.mrf.mxu1 }
 0x3f4   :  { %v649_v62 = vmax.f32 %v631_v53, 0.0  ;;  %v818_v53 = vld [vmem:[#allocation2 + $0x40] sm:$0xff] }
 0x3f5   :  { %v635_v54 = vpop.f32.mrf.mxu1 }
 0x3f6   :  { %v650_v61 = vmax.f32 %v635_v54, 0.0  ;;  %v819_v54 = vld [vmem:[#allocation2 + $0x48] sm:$0xff] }
 0x3f7   :  { %v637_v55 = vpop.f32.mrf.mxu1 }
 0x3f8   :  { %v651_v60 = vmax.f32 %v637_v55, 0.0  ;;  %v820_v55 = vld [vmem:[#allocation2 + $0x50] sm:$0xff] }
 0x3f9   :  { %v641_v56 = vpop.f32.mrf.mxu1 }
 0x3fa   :  { %v652_v59 = vmax.f32 %v641_v56, 0.0  ;;  %v821_v56 = vld [vmem:[#allocation2 + $0x58] sm:$0xff] }
 0x3fb   :  { %v643_v57 = vpop.f32.mrf.mxu1 }
 0x3fc   :  { %v653_v58 = vmax.f32 %v643_v57, 0.0 }
 0x3fe   :  { %728 = vmatprep.subr.mxu0 %v653_v58 }
 0x3ff   :  { %729 = vmatpush1.msra.mxu0 %v652_v59 }
 0x400   :  { %730 = vmatprep.subr.mxu0 %v651_v60 }
 0x401   :  { %731 = vmatpush1.msra.mxu0 %v650_v61 }
 0x402   :  { %732 = vmatprep.subr.mxu0 %v649_v62 }
 0x403   :  { %733 = vmatpush1.msra.mxu0 %v648_v63 }
 0x404   :  { %734 = vmatprep.subr.mxu0 %v647_v0 }
 0x405   :  { %735 = vmatpush1.msra.mxu0 %v646_v1 }
 0x406   :  { %1281 = vmatmul.mubr.msk.f32.vlgmr.msra.gmra.mxu0 %vm138_vm0, %v1273_v2 }
 0x407   :  { %774 = vmatprep.mubr.f32.mxu0 %v1379_v9 }
 0x40a   :  { %1282 = vmatmul.mubr.msk.f32.gmra.mxu0 %vm138_vm0, %v1274_v3 }
 0x40b   :  { %780 = vmatprep.mubr.f32.mxu0 %v1379_v9 }
 0x40e   :  { %1283 = vmatmul.mubr.msk.f32.gmra.mxu0 %vm138_vm0, %v1275_v4 }
 0x40f   :  { %786 = vmatprep.mubr.f32.mxu0 %v1379_v9 }
 0x412   :  { %1284 = vmatmul.mubr.msk.f32.gmra.mxu0 %vm138_vm0, %v1276_v5 }
 0x413   :  { %1045 = vmatprep.mubr.f32.mxu0 %v1379_v9 }
 0x4c6   :  { %v770_v6 = vpop.f32.mrf.mxu0 }
 0x4c7   :  { %v771_v39 = vadd.f32 %v770_v6, %v684_v33 }
 0x4c8   :  { %v772_v7 = vpop.f32.mrf.mxu0 }
 0x4c9   :  { %v773_v36 = vadd.f32 %v772_v7, %v685_v30  ;;  %v1285_v47 = vclamps-f32 %v771_v39, 0.1 }
 0x4ca   :  { %v776_v10 = vpop.f32.mrf.mxu0 }
 0x4cb   :  { %v777_v34 = vadd.f32 %v776_v10, %v686_v25  ;;  %v1286_v45 = vclamps-f32 %v773_v36, 0.1  ;;  %v809_v52 = vsub.f32 %v771_v39, %v1285_v47  ;;  %v1297_v10 = vld [vmem:[%s1649_s3 + $0x60] sm:$0xff] }
 0x4cc   :  { %v778_v12 = vpop.f32.mrf.mxu0 }
 0x4cd   :  { %v779_v31 = vadd.f32 %v778_v12, %v687_v22  ;;  %v1287_v43 = vclamps-f32 %v777_v34, 0.1  ;;  %v810_v51 = vsub.f32 %v773_v36, %v1286_v45  ;;  %v1299_v12 = vld [vmem:[%s1649_s3 + $0x70] sm:$0xff] }
 0x4ce   :  { %v782_v13 = vpop.f32.mrf.mxu0 }
 0x4cf   :  { %v783_v26 = vadd.f32 %v782_v13, %v688_v18  ;;  %v1288_v41 = vclamps-f32 %v779_v31, 0.1  ;;  %v811_v50 = vsub.f32 %v777_v34, %v1287_v43  ;;  %v1300_v13 = vld [vmem:[%s1649_s3 + $0x78] sm:$0xff]  ;;  %v954_v18 = vpop.permute.xlu1 %953  ;;  %s1380_s3 = smov [#allocation5]  }
 0x4d0   :  { %v784_v15 = vpop.f32.mrf.mxu0  ;;  %v965_v25 = vmul.f32 %v954_v18, %v1489_v28  ;;  %s1221_s20 = sshll.u32 %s1380_s3, 4  ;;  %s1222_s20 = int_to_ptr.vmem [resolvable:$true] %s1221_s20 }
 0x4d1   :  { %v785_v23 = vadd.f32 %v784_v15, %v689_v17  ;;  %v1289_v40 = vclamps-f32 %v783_v26, 0.1  ;;  %v812_v49 = vsub.f32 %v779_v31, %v1288_v41  ;;  %s1351_s21 = scalar_lea.vmem %s1222_s20, 1024  ;;  %p1356_p6 = scmp.lt.s32.totalorder %s1222_s20, %s1222_s20 }
 0x4d2   :  { %v788_v20 = vpop.f32.mrf.mxu0  ;;  %p1352_p5 = scmp.ne.s32.totalorder %s1222_s20, %s1351_s21  ;;  %p1357_p7 = scmp.lt.s32.totalorder %s1351_s21, %s1351_s21 }
 0x4d3   :  { %v789_v24 = vadd.f32 %v788_v20, %v690_v16  ;;  %v1290_v37 = vclamps-f32 %v785_v23, 0.1  ;;  %v813_v48 = vsub.f32 %v783_v26, %v1289_v40  ;;  %v959_v16 = vpop.permute.xlu0 %958  ;;  %v944_v26 = vpop.permute.xlu1 %943 }
 0x4d4   :  { %v790_v27 = vpop.f32.mrf.mxu0  ;;  %v968_v30 = vmul.f32 %v959_v16, %v1491_v29  ;;  %v961_v40 = vmul.f32 %v944_v26, %v1489_v28  ;;  %p1358_p8 = por %p1357_p7, %p1356_p6 }
 0x4d5   :  { %v791_v32 = vadd.f32 %v790_v27, %v691_v21  ;;  %v1291_v35 = vclamps-f32 %v789_v24, 0.1  ;;  %v814_v46 = vsub.f32 %v785_v23, %v1290_v37  ;;  %v967_v23 = vmul.f32 %v959_v16, %v1489_v28 }
 0x4d6   :  { %v962_v37 = vmul.f32 %v944_v26, %v1491_v29  ;;  %p1359_p9 = pnand %p1358_p8, %p1352_p5 }
 0x4d7   :  { %v1292_v38 = vclamps-f32 %v791_v32, 0.1  ;;  %v815_v44 = vsub.f32 %v789_v24, %v1291_v35  ;;  %v949_v21 = vpop.permute.xlu0 %948  ;;  %v966_v24 = vmul.f32 %v954_v18, %v1491_v29 }
 0x4d8   :  { %v964_v31 = vmul.f32 %v949_v21, %v1491_v29  ;;  %v963_v34 = vmul.f32 %v949_v21, %v1489_v28 }
 0x4d9   :  { %v816_v42 = vsub.f32 %v791_v32, %v1292_v38 }
 0x4db   :  { %858 = vmatprep.subr.mxu1 %v816_v42 }
 0x4dc   :  { %859 = vmatpush1.msra.mxu1 %v815_v44 }
 0x4dd   :  { %860 = vmatprep.subr.mxu1 %v814_v46 }
 0x4de   :  { %861 = vmatpush1.msra.mxu1 %v813_v48 }
 0x4df   :  { %862 = vmatprep.subr.mxu1 %v812_v49 }
 0x4e0   :  { %863 = vmatpush1.msra.mxu1 %v811_v50 }
 0x4e1   :  { %864 = vmatprep.subr.mxu1 %v810_v51 }
 0x4e2   :  { %865 = vmatpush1.msra.mxu1 %v809_v52 }
 0x4e3   :  { %1293 = vmatmul.mubr.msk.f32.vlgmr.msra.gmra.mxu1 %vm138_vm0, %v818_v53 }
 0x4e4   :  { %904 = vmatprep.mubr.f32.mxu1 %v1379_v9 }
 0x4e7   :  { %1294 = vmatmul.mubr.msk.f32.gmra.mxu1 %vm138_vm0, %v819_v54 }
 0x4e8   :  { %910 = vmatprep.mubr.f32.mxu1 %v1379_v9 }
 0x4eb   :  { %1295 = vmatmul.mubr.msk.f32.gmra.mxu1 %vm138_vm0, %v820_v55 }
 0x4ec   :  { %916 = vmatprep.mubr.f32.mxu1 %v1379_v9 }
 0x4ef   :  { %1296 = vmatmul.mubr.msk.f32.gmra.mxu1 %vm138_vm0, %v821_v56 }
 0x4f0   :  { %1175 = vmatprep.mubr.f32.mxu1 %v1379_v9 }
 0x5a3   :  { %v900_v57 = vpop.f32.mrf.mxu1 }
 0x5a4   :  { %v923_v8 = vmax.f32 %v900_v57, 0.0 }
 0x5a5   :  { %v902_v58 = vpop.f32.mrf.mxu1 }
 0x5a6   :  { %v924_v7 = vmax.f32 %v902_v58, 0.0  ;;  %v1095_v58 = vld [vmem:[#allocation2 + $0x60] sm:$0xff] }
 0x5a7   :  { %v906_v59 = vpop.f32.mrf.mxu1 }
 0x5a8   :  { %v925_v6 = vmax.f32 %v906_v59, 0.0  ;;  %v1096_v59 = vld [vmem:[#allocation2 + $0x68] sm:$0xff] }
 0x5a9   :  { %v908_v60 = vpop.f32.mrf.mxu1 }
 0x5aa   :  { %v926_v5 = vmax.f32 %v908_v60, 0.0  ;;  %v1097_v60 = vld [vmem:[#allocation2 + $0x70] sm:$0xff] }
 0x5ab   :  { %v912_v61 = vpop.f32.mrf.mxu1 }
 0x5ac   :  { %v927_v4 = vmax.f32 %v912_v61, 0.0  ;;  %v1098_v61 = vld [vmem:[#allocation2 + $0x78] sm:$0xff] }
 0x5ad   :  { %v914_v62 = vpop.f32.mrf.mxu1 }
 0x5ae   :  { %v928_v3 = vmax.f32 %v914_v62, 0.0 }
 0x5af   :  { %v918_v63 = vpop.f32.mrf.mxu1 }
 0x5b0   :  { %v929_v2 = vmax.f32 %v918_v63, 0.0 }
 0x5b1   :  { %v920_v0 = vpop.f32.mrf.mxu1 }
 0x5b2   :  { %v930_v1 = vmax.f32 %v920_v0, 0.0 }
 0x5b4   :  { %1005 = vmatprep.subr.mxu0 %v930_v1 }
 0x5b5   :  { %1006 = vmatpush1.msra.mxu0 %v929_v2 }
 0x5b6   :  { %1007 = vmatprep.subr.mxu0 %v928_v3 }
 0x5b7   :  { %1008 = vmatpush1.msra.mxu0 %v927_v4 }
 0x5b8   :  { %1009 = vmatprep.subr.mxu0 %v926_v5 }
 0x5b9   :  { %1010 = vmatpush1.msra.mxu0 %v925_v6 }
 0x5ba   :  { %1011 = vmatprep.subr.mxu0 %v924_v7 }
 0x5bb   :  { %1012 = vmatpush1.msra.mxu0 %v923_v8 }
 0x5bc   :  { %1305 = vmatmul.mubr.msk.f32.vlgmr.msra.gmra.mxu0 %vm138_vm0, %v1297_v10 }
 0x5bd   :  { %1051 = vmatprep.mubr.f32.mxu0 %v1379_v9 }
 0x5c0   :  { %1306 = vmatmul.mubr.msk.f32.gmra.mxu0 %vm138_vm0, %v1298_v11 }
 0x5c1   :  { %1057 = vmatprep.mubr.f32.mxu0 %v1379_v9 }
 0x5c4   :  { %1307 = vmatmul.mubr.msk.f32.gmra.mxu0 %vm138_vm0, %v1299_v12 }
 0x5c5   :  { %1063 = vmatprep.mubr.f32.mxu0 %v1379_v9 }
 0x5c8   :  { %1308 = vmatmul.mubr.msk.f32.gmra.mxu0 %vm138_vm0, %v1300_v13 }
 0x67c   :  { %v1047_v14 = vpop.f32.mrf.mxu0 }
 0x67d   :  { %v1048_v46 = vadd.f32 %v1047_v14, %v961_v40 }
 0x67e   :  { %v1049_v15 = vpop.f32.mrf.mxu0 }
 0x67f   :  { %v1050_v43 = vadd.f32 %v1049_v15, %v962_v37  ;;  %v1309_v54 = vclamps-f32 %v1048_v46, 0.1 }
 0x680   :  { %v1053_v17 = vpop.f32.mrf.mxu0 }
 0x681   :  { %v1054_v41 = vadd.f32 %v1053_v17, %v963_v34  ;;  %v1310_v52 = vclamps-f32 %v1050_v43, 0.1  ;;  %v1086_v57 = vsub.f32 %v1048_v46, %v1309_v54 }
 0x682   :  { %v1055_v19 = vpop.f32.mrf.mxu0 }
 0x683   :  { %v1056_v38 = vadd.f32 %v1055_v19, %v964_v31  ;;  %v1311_v50 = vclamps-f32 %v1054_v41, 0.1  ;;  %v1087_v56 = vsub.f32 %v1050_v43, %v1310_v52 }
 0x684   :  { %v1059_v20 = vpop.f32.mrf.mxu0 }
 0x685   :  { %v1060_v35 = vadd.f32 %v1059_v20, %v965_v25  ;;  %v1312_v48 = vclamps-f32 %v1056_v38, 0.1  ;;  %v1088_v28 = vsub.f32 %v1054_v41, %v1311_v50 }
 0x686   :  { %v1061_v22 = vpop.f32.mrf.mxu0 }
 0x687   :  { %v1062_v32 = vadd.f32 %v1061_v22, %v966_v24  ;;  %v1313_v47 = vclamps-f32 %v1060_v35, 0.1  ;;  %v1089_v55 = vsub.f32 %v1056_v38, %v1312_v48 }
 0x688   :  { %v1065_v27 = vpop.f32.mrf.mxu0 }
 0x689   :  { %v1066_v33 = vadd.f32 %v1065_v27, %v967_v23  ;;  %v1314_v44 = vclamps-f32 %v1062_v32, 0.1  ;;  %v1090_v29 = vsub.f32 %v1060_v35, %v1313_v47 }
 0x68a   :  { %v1067_v36 = vpop.f32.mrf.mxu0 }
 0x68b   :  { %v1068_v39 = vadd.f32 %v1067_v36, %v968_v30  ;;  %v1315_v42 = vclamps-f32 %v1066_v33, 0.1  ;;  %v1091_v53 = vsub.f32 %v1062_v32, %v1314_v44 }
 0x68d   :  { %v1316_v45 = vclamps-f32 %v1068_v39, 0.1  ;;  %v1092_v51 = vsub.f32 %v1066_v33, %v1315_v42 }
 0x68f   :  { %v1093_v49 = vsub.f32 %v1068_v39, %v1316_v45 }
 0x691   :  { %1135 = vmatprep.subr.mxu1 %v1093_v49 }
 0x692   :  { %1136 = vmatpush1.msra.mxu1 %v1092_v51 }
 0x693   :  { %1137 = vmatprep.subr.mxu1 %v1091_v53 }
 0x694   :  { %1138 = vmatpush1.msra.mxu1 %v1090_v29 }
 0x695   :  { %1139 = vmatprep.subr.mxu1 %v1089_v55 }
 0x696   :  { %1140 = vmatpush1.msra.mxu1 %v1088_v28 }
 0x697   :  { %1141 = vmatprep.subr.mxu1 %v1087_v56 }
 0x698   :  { %1142 = vmatpush1.msra.mxu1 %v1086_v57 }
 0x699   :  { %1317 = vmatmul.mubr.msk.f32.vlgmr.msra.gmra.mxu1 %vm138_vm0, %v1095_v58 }
 0x69a   :  { %1181 = vmatprep.mubr.f32.mxu1 %v1379_v9 }
 0x69d   :  { %1318 = vmatmul.mubr.msk.f32.gmra.mxu1 %vm138_vm0, %v1096_v59 }
 0x69e   :  { %1187 = vmatprep.mubr.f32.mxu1 %v1379_v9 }
 0x6a1   :  { %1319 = vmatmul.mubr.msk.f32.gmra.mxu1 %vm138_vm0, %v1097_v60 }
 0x6a2   :  { %1193 = vmatprep.mubr.f32.mxu1 %v1379_v9 }
 0x6a5   :  { %1320 = vmatmul.mubr.msk.f32.gmra.mxu1 %vm138_vm0, %v1098_v61 }
 0x759   :  { %v1177_v62 = vpop.f32.mrf.mxu1 }
 0x75a   :  { %v1200_v63 = vmax.f32 %v1177_v62, 0.0 }
 0x75b   :  { %v1179_v0 = vpop.f32.mrf.mxu1 }
 0x75c   :  { %1208 = vst [vmem:[#allocation5] sm:$0xff] %v1200_v63  ;;  %v1201_v1 = vmax.f32 %v1179_v0, 0.0 }
 0x75d   :  { %v1183_v2 = vpop.f32.mrf.mxu1 }
 0x75e   :  { %1209 = vst [vmem:[#allocation5 + $0x8] sm:$0xff] %v1201_v1  ;;  %v1202_v3 = vmax.f32 %v1183_v2, 0.0 }
 0x75f   :  { %v1185_v4 = vpop.f32.mrf.mxu1 }
 0x760   :  { %1210 = vst [vmem:[#allocation5 + $0x10] sm:$0xff] %v1202_v3  ;;  %v1203_v5 = vmax.f32 %v1185_v4, 0.0 }
 0x761   :  { %v1189_v6 = vpop.f32.mrf.mxu1 }
 0x762   :  { %1211 = vst [vmem:[#allocation5 + $0x18] sm:$0xff] %v1203_v5  ;;  %v1204_v7 = vmax.f32 %v1189_v6, 0.0 }
 0x763   :  { %v1191_v8 = vpop.f32.mrf.mxu1 }
 0x764   :  { %1212 = vst [vmem:[#allocation5 + $0x20] sm:$0xff] %v1204_v7  ;;  %v1205_v9 = vmax.f32 %v1191_v8, 0.0 }
 0x765   :  { %v1195_v10 = vpop.f32.mrf.mxu1 }
 0x766   :  { %1213 = vst [vmem:[#allocation5 + $0x28] sm:$0xff] %v1205_v9  ;;  %v1206_v11 = vmax.f32 %v1195_v10, 0.0 }
 0x767   :  { %v1197_v12 = vpop.f32.mrf.mxu1 }
 0x768   :  { %1214 = vst [vmem:[#allocation5 + $0x30] sm:$0xff] %v1206_v11  ;;  %v1207_v13 = vmax.f32 %v1197_v12, 0.0 }
 0x76a   :  { %1215 = vst [vmem:[#allocation5 + $0x38] sm:$0xff] %v1207_v13 }
 0x76b   :  { %1362 = shalt.err (!%p1359_p9)
}
 0x76c   :  { %s1381_s22 = smov 256   ;;  %s1382_s23 = smov 16  }
 0x76d   :  { %1227 = dma.vmem_to_hbm [thread:$0]  %s1222_s20, 1024, %s1652_s6, [#allocation4], %s1381_s22, %s1381_s22, %s1382_s23  }
 0x76e   :  { %1373 = dma.done.wait [#allocation4], 1024  }
 0x76f   :  { %1374 = vsyncadd [#allocation4], 4294966272 }
 0x770   :  { %1231 = vsyncpa [#allocation3], 1 }
 0x771   :  { %1232 = vsyncpa [#allocation4], 1 }

</bundles_post_ra>
